<compile_context>
chip_gen: v7x
topology: tpu7x:2x2x1
jax: 0.10.0
libtpu: 0.0.40
codegen_flags: <defaults>
</compile_context>

<pallas_src>
import jax
import jax.numpy as jnp
from jax.experimental import pallas as pl
from jax.experimental.pallas import tpu as pltpu


def _head_kernel(x_ref, w1ta_ref, w1tm_ref, w2t_ref, b1_ref, b2_ref,
                 s1a_ref, h1a_ref, s1m_ref, h1m_ref, s2_ref, h2_ref, o_ref):
    # x_ref: (TB, C, HW) trunk feature tile (f32 or bf16)
    x = x_ref[...].astype(jnp.float32)

    # ---- AdaptiveAvgPool2d((1,1)) + AdaptiveMaxPool2d((1,1)) over HW ----
    avg = jnp.mean(x, axis=2)                                  # (TB, C)
    mx = jnp.max(x, axis=2)                                    # (TB, C)

    # ---- BatchNorm1d(2C) (inference), applied per concat half ----
    za = avg * s1a_ref[...] + h1a_ref[...]                     # (TB, C)
    zm = mx * s1m_ref[...] + h1m_ref[...]                      # (TB, C)

    # ---- Linear(2C, C) in split row-vector form (avoids a lane concat) ----
    h = (jnp.dot(za, w1ta_ref[...], preferred_element_type=jnp.float32)
         + jnp.dot(zm, w1tm_ref[...], preferred_element_type=jnp.float32)
         + b1_ref[...])                                        # (TB, C)
    h = jnp.maximum(h, 0.0)                                    # ReLU

    # ---- BatchNorm1d(C) (inference) ----
    h = h * s2_ref[...] + h2_ref[...]

    # ---- Linear(C, num_classes) -> logits ----
    fc = jnp.dot(h, w2t_ref[...], preferred_element_type=jnp.float32) + b2_ref[...]
    o_ref[...] = fc.astype(o_ref.dtype)


def resnet_head_forward(feat, params, *, eps=1e-5,
                        target_block_bytes=2 * 1024 * 1024):
    """feat: (N, C, H, W) trunk output (f32 or bf16). Returns f32 logits (N, K)."""
    (w1, b1, w2, b2,
     bn1_g, bn1_b, bn1_rm, bn1_rv,
     bn2_g, bn2_b, bn2_rm, bn2_rv) = params

    N, C, H, W = feat.shape
    HW = H * W
    K = w2.shape[0]
    itemsize = jnp.dtype(feat.dtype).itemsize
    f32 = jnp.float32

    x_flat = feat.reshape(N, C, HW)                    # contiguous, no transpose

    # ---- batch-tile size: ~target_block_bytes of the f32 working copy in VMEM
    hw_pad = ((HW + 127) // 128) * 128                 # lane padding in VMEM
    vmem_bytes_per_example = C * hw_pad * 4
    tb = max(1, int(target_block_bytes // vmem_bytes_per_example))
    tb = min(tb, N)
    if N >= 16:
        tb = min(tb, pl.cdiv(N, 2))                    # >= 2 steps (v7x: 2 TCs)
    if tb < N:
        tb = max(8, (tb // 8) * 8)                     # 8-align (TB, K) out block
        n_pad = pl.cdiv(N, tb) * tb
        if n_pad != N:
            x_flat = jnp.pad(x_flat, ((0, n_pad - N), (0, 0), (0, 0)))
    else:
        tb, n_pad = N, N
    grid = (n_pad // tb,)
    xblock = (tb, C, HW)

    # ---- parameters in kernel-friendly f32 row-vector form ----
    w1t = jnp.asarray(w1, f32).T                       # (2C, C)
    w1t_a, w1t_m = w1t[:C], w1t[C:]                    # avg / max input halves
    w2t = jnp.asarray(w2, f32).T                       # (C, K)
    b1r = jnp.asarray(b1, f32).reshape(1, C)
    b2r = jnp.asarray(b2, f32).reshape(1, K)

    # Inference-mode BatchNorm1d as scale/shift vectors.
    s1 = jnp.asarray(bn1_g, f32) * jax.lax.rsqrt(jnp.asarray(bn1_rv, f32) + eps)
    h1 = jnp.asarray(bn1_b, f32) - jnp.asarray(bn1_rm, f32) * s1
    s1a, s1m = s1[:C].reshape(1, C), s1[C:].reshape(1, C)
    h1a, h1m = h1[:C].reshape(1, C), h1[C:].reshape(1, C)
    s2v = jnp.asarray(bn2_g, f32) * jax.lax.rsqrt(jnp.asarray(bn2_rv, f32) + eps)
    h2v = jnp.asarray(bn2_b, f32) - jnp.asarray(bn2_rm, f32) * s2v
    s2, h2 = s2v.reshape(1, C), h2v.reshape(1, C)

    cost = pl.CostEstimate(
        flops=3 * N * C * HW + 2 * N * (2 * C * C + C * K),
        transcendentals=0,
        bytes_accessed=(N * C * HW * itemsize + N * K * 4
                        + 4 * (2 * C * C + C * K + 8 * C + K)),
    )

    vec_spec = lambda: pl.BlockSpec((1, C), lambda n: (0, 0))

    out = pl.pallas_call(
        _head_kernel,
        out_shape=jax.ShapeDtypeStruct((n_pad, K), f32),
        grid_spec=pltpu.PrefetchScalarGridSpec(
            num_scalar_prefetch=0,
            grid=grid,
            in_specs=[
                pl.BlockSpec(xblock, lambda n: (n, 0, 0)),        # trunk features
                pl.BlockSpec((C, C), lambda n: (0, 0)),           # W1^T avg half
                pl.BlockSpec((C, C), lambda n: (0, 0)),           # W1^T max half
                pl.BlockSpec((C, K), lambda n: (0, 0)),           # W2^T
                vec_spec(),                                       # b1
                pl.BlockSpec((1, K), lambda n: (0, 0)),           # b2
                vec_spec(), vec_spec(),                           # BN1 scale/shift (avg)
                vec_spec(), vec_spec(),                           # BN1 scale/shift (max)
                vec_spec(), vec_spec(),                           # BN2 scale/shift
            ],
            out_specs=pl.BlockSpec((tb, K), lambda n: (n, 0)),
        ),
        compiler_params=pltpu.CompilerParams(
            dimension_semantics=("parallel",),
        ),
        cost_estimate=cost,
    )(x_flat, w1t_a, w1t_m, w2t, b1r, b2r, s1a, h1a, s1m, h1m, s2, h2)

    return out[:N]


def init_head_params(key, num_channels, num_classes):
    """Classifier params: Linear(2C,C), Linear(C,K) and the two BatchNorm1d."""
    C = num_channels
    ks = jax.random.split(key, 8)
    w1 = jax.random.normal(ks[0], (C, 2 * C), jnp.float32) / (2 * C) ** 0.5
    b1 = 0.05 * jax.random.normal(ks[1], (C,), jnp.float32)
    w2 = jax.random.normal(ks[2], (num_classes, C), jnp.float32) / C ** 0.5
    b2 = 0.05 * jax.random.normal(ks[3], (num_classes,), jnp.float32)
    # Non-trivial inference-mode BatchNorm statistics / affine params.
    bn1_g = 1.0 + 0.2 * jax.random.normal(ks[4], (2 * C,), jnp.float32)
    bn1_b = 0.1 * jax.random.normal(ks[5], (2 * C,), jnp.float32)
    bn1_rm = 0.1 * jax.random.normal(ks[6], (2 * C,), jnp.float32)
    k2 = jax.random.split(ks[7], 5)
    bn1_rv = 1.0 + 0.3 * jax.random.uniform(k2[0], (2 * C,), jnp.float32)
    bn2_g = 1.0 + 0.2 * jax.random.normal(k2[1], (C,), jnp.float32)
    bn2_b = 0.1 * jax.random.normal(k2[2], (C,), jnp.float32)
    bn2_rm = 0.1 * jax.random.normal(k2[3], (C,), jnp.float32)
    bn2_rv = 1.0 + 0.3 * jax.random.uniform(k2[4], (C,), jnp.float32)
    return (w1, b1, w2, b2, bn1_g, bn1_b, bn1_rm, bn1_rv,
            bn2_g, bn2_b, bn2_rm, bn2_rv)


def head_reference(feat, params, eps=1e-5):
    """Pure-JAX f32 reference: avg+max pool -> cat -> BN -> FC -> ReLU -> BN -> FC."""
    (w1, b1, w2, b2, g1, be1, rm1, rv1, g2, be2, rm2, rv2) = params
    x = feat.astype(jnp.float32)
    avg = jnp.mean(x, axis=(2, 3))
    mx = jnp.max(x, axis=(2, 3))
    pooled = jnp.concatenate([avg, mx], axis=1)                 # (N, 2C)
    z = (pooled - rm1) / jnp.sqrt(rv1 + eps) * g1 + be1         # BN1d(2C) eval
    h = jnp.maximum(z @ w1.T + b1, 0.0)                         # Linear + ReLU
    h = (h - rm2) / jnp.sqrt(rv2 + eps) * g2 + be2              # BN1d(C) eval
    return h @ w2.T + b2                                        # logits (N, K)


def _run_case(key, N, C, H, W, K, dtype, atol, rtol, **fwd_kwargs):
    kx, kp = jax.random.split(key)
    feat32 = jax.random.normal(kx, (N, C, H, W), jnp.float32)
    params = init_head_params(kp, C, K)
    feat = feat32.astype(dtype)

    out = jax.block_until_ready(resnet_head_forward(feat, params, **fwd_kwargs))
    ref = head_reference(feat, params)

    assert out.shape == (N, K) and out.dtype == jnp.float32
    assert jnp.allclose(out, ref, atol=atol, rtol=rtol), (
        f"mismatch vs reference for shape {(N, C, H, W)} dtype {dtype}: "
        f"max abs err {float(jnp.max(jnp.abs(out - ref)))}")


if __name__ == "__main__":
    root = jax.random.PRNGKey(0)
    k1, k2, k3, k4 = jax.random.split(root, 4)

    # Tolerances: TPU matmuls at default precision round f32 inputs to bf16, so
    # kernel vs reference logits can differ at the ~1e-2 level.

    # f32, HW = 256 (multiple of 128, lane-dense loads); single batch tile.
    _run_case(k1, N=2, C=64, H=16, W=16, K=10, dtype=jnp.float32,
              atol=5e-2, rtol=5e-2)

    # bf16 trunk features (halves HBM traffic); pooling / BN / FCs stay f32.
    _run_case(k2, N=2, C=64, H=16, W=16, K=10, dtype=jnp.bfloat16,
              atol=5e-2, rtol=5e-2)

    # 7x7 final ResNet stage (HW = 49 < one lane group): contiguous DMA, lane
    # padding only in VMEM.
    _run_case(k3, N=4, C=128, H=7, W=7, K=10, dtype=jnp.float32,
              atol=5e-2, rtol=5e-2)

    # Multi-step grid + batch padding: small block target forces TB = 8 tiles
    # (12 examples -> padded to 16, grid of 2 "parallel" steps).
    _run_case(k4, N=12, C=128, H=8, W=8, K=10, dtype=jnp.float32,
              atol=5e-2, rtol=5e-2, target_block_bytes=96 * 1024)

    print("KERNEL_OK")
</pallas_src>

<mosaic_0001>
module attributes {stable_mosaic.version = 11 : i64} {
  func.func @_head_kernel(%arg0: i32, %arg1: memref<2x64x256xf32, #tpu.memory_space<vmem>>, %arg2: memref<64x64xf32, #tpu.memory_space<vmem>>, %arg3: memref<64x64xf32, #tpu.memory_space<vmem>>, %arg4: memref<64x10xf32, #tpu.memory_space<vmem>>, %arg5: memref<1x64xf32, #tpu.memory_space<vmem>>, %arg6: memref<1x10xf32, #tpu.memory_space<vmem>>, %arg7: memref<1x64xf32, #tpu.memory_space<vmem>>, %arg8: memref<1x64xf32, #tpu.memory_space<vmem>>, %arg9: memref<1x64xf32, #tpu.memory_space<vmem>>, %arg10: memref<1x64xf32, #tpu.memory_space<vmem>>, %arg11: memref<1x64xf32, #tpu.memory_space<vmem>>, %arg12: memref<1x64xf32, #tpu.memory_space<vmem>>, %arg13: memref<2x10xf32, #tpu.memory_space<vmem>>) attributes {dimension_semantics = [#tpu.dimension_semantics<parallel>], iteration_bounds = array<i64: 1>, scalar_prefetch = 0 : i64, scratch_operands = 0 : i64, tpu.core_type = #tpu.core_type<tc>, window_params = [{transform_indices = @transform_0, window_bounds = array<i64: 2, 64, 256>}, {pipeline_mode = #tpu.pipeline_mode<synchronous>, transform_indices = @transform_1, window_bounds = array<i64: 64, 64>}, {pipeline_mode = #tpu.pipeline_mode<synchronous>, transform_indices = @transform_2, window_bounds = array<i64: 64, 64>}, {pipeline_mode = #tpu.pipeline_mode<synchronous>, transform_indices = @transform_3, window_bounds = array<i64: 64, 10>}, {pipeline_mode = #tpu.pipeline_mode<synchronous>, transform_indices = @transform_4, window_bounds = array<i64: 1, 64>}, {pipeline_mode = #tpu.pipeline_mode<synchronous>, transform_indices = @transform_5, window_bounds = array<i64: 1, 10>}, {pipeline_mode = #tpu.pipeline_mode<synchronous>, transform_indices = @transform_6, window_bounds = array<i64: 1, 64>}, {pipeline_mode = #tpu.pipeline_mode<synchronous>, transform_indices = @transform_7, window_bounds = array<i64: 1, 64>}, {pipeline_mode = #tpu.pipeline_mode<synchronous>, transform_indices = @transform_8, window_bounds = array<i64: 1, 64>}, {pipeline_mode = #tpu.pipeline_mode<synchronous>, transform_indices = @transform_9, window_bounds = array<i64: 1, 64>}, {pipeline_mode = #tpu.pipeline_mode<synchronous>, transform_indices = @transform_10, window_bounds = array<i64: 1, 64>}, {pipeline_mode = #tpu.pipeline_mode<synchronous>, transform_indices = @transform_11, window_bounds = array<i64: 1, 64>}, {transform_indices = @transform_12, window_bounds = array<i64: 2, 10>}]} {
    %c0 = arith.constant 0 : index
    %c0_0 = arith.constant 0 : index
    %c0_1 = arith.constant 0 : index
    %0 = vector.load %arg1[%c0, %c0_0, %c0_1] : memref<2x64x256xf32, #tpu.memory_space<vmem>>, vector<2x64x256xf32>
    %cst = arith.constant dense<0.000000e+00> : vector<2x64xf32>
    %1 = vector.multi_reduction <add>, %0, %cst [2] : vector<2x64x256xf32> to vector<2x64xf32>
    %cst_2 = arith.constant 2.560000e+02 : f32
    %2 = vector.broadcast %cst_2 : f32 to vector<2x64xf32>
    %3 = arith.divf %1, %2 : vector<2x64xf32>
    %cst_3 = arith.constant dense<0xFF800000> : vector<2x64xf32>
    %4 = vector.multi_reduction <maximumf>, %0, %cst_3 [2] : vector<2x64x256xf32> to vector<2x64xf32>
    %c0_4 = arith.constant 0 : index
    %c0_5 = arith.constant 0 : index
    %5 = vector.load %arg7[%c0_4, %c0_5] : memref<1x64xf32, #tpu.memory_space<vmem>>, vector<1x64xf32>
    %6 = vector.broadcast %5 : vector<1x64xf32> to vector<2x64xf32>
    %7 = arith.mulf %3, %6 : vector<2x64xf32>
    %c0_6 = arith.constant 0 : index
    %c0_7 = arith.constant 0 : index
    %8 = vector.load %arg8[%c0_6, %c0_7] : memref<1x64xf32, #tpu.memory_space<vmem>>, vector<1x64xf32>
    %9 = vector.broadcast %8 : vector<1x64xf32> to vector<2x64xf32>
    %10 = arith.addf %7, %9 : vector<2x64xf32>
    %c0_8 = arith.constant 0 : index
    %c0_9 = arith.constant 0 : index
    %11 = vector.load %arg9[%c0_8, %c0_9] : memref<1x64xf32, #tpu.memory_space<vmem>>, vector<1x64xf32>
    %12 = vector.broadcast %11 : vector<1x64xf32> to vector<2x64xf32>
    %13 = arith.mulf %4, %12 : vector<2x64xf32>
    %c0_10 = arith.constant 0 : index
    %c0_11 = arith.constant 0 : index
    %14 = vector.load %arg10[%c0_10, %c0_11] : memref<1x64xf32, #tpu.memory_space<vmem>>, vector<1x64xf32>
    %15 = vector.broadcast %14 : vector<1x64xf32> to vector<2x64xf32>
    %16 = arith.addf %13, %15 : vector<2x64xf32>
    %c0_12 = arith.constant 0 : index
    %c0_13 = arith.constant 0 : index
    %17 = vector.load %arg2[%c0_12, %c0_13] : memref<64x64xf32, #tpu.memory_space<vmem>>, vector<64x64xf32>
    %cst_14 = arith.constant dense<0.000000e+00> : vector<2x64xf32>
    %18 = tpu.matmul %10, %17, %cst_14 {dimension_numbers = #tpu.dot_dimension_numbers<[1], [0], [0], [1], [0, 0, 1, 1], [], []>} : vector<2x64xf32>, vector<64x64xf32>, vector<2x64xf32> -> vector<2x64xf32>
    %c0_15 = arith.constant 0 : index
    %c0_16 = arith.constant 0 : index
    %19 = vector.load %arg3[%c0_15, %c0_16] : memref<64x64xf32, #tpu.memory_space<vmem>>, vector<64x64xf32>
    %cst_17 = arith.constant dense<0.000000e+00> : vector<2x64xf32>
    %20 = tpu.matmul %16, %19, %cst_17 {dimension_numbers = #tpu.dot_dimension_numbers<[1], [0], [0], [1], [0, 0, 1, 1], [], []>} : vector<2x64xf32>, vector<64x64xf32>, vector<2x64xf32> -> vector<2x64xf32>
    %21 = arith.addf %18, %20 : vector<2x64xf32>
    %c0_18 = arith.constant 0 : index
    %c0_19 = arith.constant 0 : index
    %22 = vector.load %arg5[%c0_18, %c0_19] : memref<1x64xf32, #tpu.memory_space<vmem>>, vector<1x64xf32>
    %23 = vector.broadcast %22 : vector<1x64xf32> to vector<2x64xf32>
    %24 = arith.addf %21, %23 : vector<2x64xf32>
    %cst_20 = arith.constant 0.000000e+00 : f32
    %25 = vector.broadcast %cst_20 : f32 to vector<2x64xf32>
    %26 = arith.maximumf %24, %25 : vector<2x64xf32>
    %c0_21 = arith.constant 0 : index
    %c0_22 = arith.constant 0 : index
    %27 = vector.load %arg11[%c0_21, %c0_22] : memref<1x64xf32, #tpu.memory_space<vmem>>, vector<1x64xf32>
    %28 = vector.broadcast %27 : vector<1x64xf32> to vector<2x64xf32>
    %29 = arith.mulf %26, %28 : vector<2x64xf32>
    %c0_23 = arith.constant 0 : index
    %c0_24 = arith.constant 0 : index
    %30 = vector.load %arg12[%c0_23, %c0_24] : memref<1x64xf32, #tpu.memory_space<vmem>>, vector<1x64xf32>
    %31 = vector.broadcast %30 : vector<1x64xf32> to vector<2x64xf32>
    %32 = arith.addf %29, %31 : vector<2x64xf32>
    %c0_25 = arith.constant 0 : index
    %c0_26 = arith.constant 0 : index
    %33 = vector.load %arg4[%c0_25, %c0_26] : memref<64x10xf32, #tpu.memory_space<vmem>>, vector<64x10xf32>
    %cst_27 = arith.constant dense<0.000000e+00> : vector<2x10xf32>
    %34 = tpu.matmul %32, %33, %cst_27 {dimension_numbers = #tpu.dot_dimension_numbers<[1], [0], [0], [1], [0, 0, 1, 1], [], []>} : vector<2x64xf32>, vector<64x10xf32>, vector<2x10xf32> -> vector<2x10xf32>
    %c0_28 = arith.constant 0 : index
    %c0_29 = arith.constant 0 : index
    %35 = vector.load %arg6[%c0_28, %c0_29] : memref<1x10xf32, #tpu.memory_space<vmem>>, vector<1x10xf32>
    %36 = vector.broadcast %35 : vector<1x10xf32> to vector<2x10xf32>
    %37 = arith.addf %34, %36 : vector<2x10xf32>
    %c0_30 = arith.constant 0 : index
    %c0_31 = arith.constant 0 : index
    %38 = vector.load %arg13[%c0_30, %c0_31] : memref<2x10xf32, #tpu.memory_space<vmem>>, vector<2x10xf32>
    tpu.vector_store %arg13[%c0_30, %c0_31], %37 {strides = array<i32>} : memref<2x10xf32, #tpu.memory_space<vmem>>, vector<2x10xf32>,
    return
  }
  func.func @transform_0(%arg0: i32) -> (i32, i32, i32) {
    %c0_i32 = arith.constant 0 : i32
    %c0_i32_0 = arith.constant 0 : i32
    %c0_i32_1 = arith.constant 0 : i32
    return %arg0, %c0_i32, %c0_i32_0 : i32, i32, i32
  }
  func.func @transform_1(%arg0: i32) -> (i32, i32) {
    %c0_i32 = arith.constant 0 : i32
    %c0_i32_0 = arith.constant 0 : i32
    %c0_i32_1 = arith.constant 0 : i32
    return %c0_i32, %c0_i32_0 : i32, i32
  }
  func.func @transform_2(%arg0: i32) -> (i32, i32) {
    %c0_i32 = arith.constant 0 : i32
    %c0_i32_0 = arith.constant 0 : i32
    %c0_i32_1 = arith.constant 0 : i32
    return %c0_i32, %c0_i32_0 : i32, i32
  }
  func.func @transform_3(%arg0: i32) -> (i32, i32) {
    %c0_i32 = arith.constant 0 : i32
    %c0_i32_0 = arith.constant 0 : i32
    %c0_i32_1 = arith.constant 0 : i32
    return %c0_i32, %c0_i32_0 : i32, i32
  }
  func.func @transform_4(%arg0: i32) -> (i32, i32) {
    %c0_i32 = arith.constant 0 : i32
    %c0_i32_0 = arith.constant 0 : i32
    %c0_i32_1 = arith.constant 0 : i32
    return %c0_i32, %c0_i32_0 : i32, i32
  }
  func.func @transform_5(%arg0: i32) -> (i32, i32) {
    %c0_i32 = arith.constant 0 : i32
    %c0_i32_0 = arith.constant 0 : i32
    %c0_i32_1 = arith.constant 0 : i32
    return %c0_i32, %c0_i32_0 : i32, i32
  }
  func.func @transform_6(%arg0: i32) -> (i32, i32) {
    %c0_i32 = arith.constant 0 : i32
    %c0_i32_0 = arith.constant 0 : i32
    %c0_i32_1 = arith.constant 0 : i32
    return %c0_i32, %c0_i32_0 : i32, i32
  }
  func.func @transform_7(%arg0: i32) -> (i32, i32) {
    %c0_i32 = arith.constant 0 : i32
    %c0_i32_0 = arith.constant 0 : i32
    %c0_i32_1 = arith.constant 0 : i32
    return %c0_i32, %c0_i32_0 : i32, i32
  }
  func.func @transform_8(%arg0: i32) -> (i32, i32) {
    %c0_i32 = arith.constant 0 : i32
    %c0_i32_0 = arith.constant 0 : i32
    %c0_i32_1 = arith.constant 0 : i32
    return %c0_i32, %c0_i32_0 : i32, i32
  }
  func.func @transform_9(%arg0: i32) -> (i32, i32) {
    %c0_i32 = arith.constant 0 : i32
    %c0_i32_0 = arith.constant 0 : i32
    %c0_i32_1 = arith.constant 0 : i32
    return %c0_i32, %c0_i32_0 : i32, i32
  }
  func.func @transform_10(%arg0: i32) -> (i32, i32) {
    %c0_i32 = arith.constant 0 : i32
    %c0_i32_0 = arith.constant 0 : i32
    %c0_i32_1 = arith.constant 0 : i32
    return %c0_i32, %c0_i32_0 : i32, i32
  }
  func.func @transform_11(%arg0: i32) -> (i32, i32) {
    %c0_i32 = arith.constant 0 : i32
    %c0_i32_0 = arith.constant 0 : i32
    %c0_i32_1 = arith.constant 0 : i32
    return %c0_i32, %c0_i32_0 : i32, i32
  }
  func.func @transform_12(%arg0: i32) -> (i32, i32) {
    %c0_i32 = arith.constant 0 : i32
    %c0_i32_0 = arith.constant 0 : i32
    return %arg0, %c0_i32 : i32, i32
  }
}

</mosaic_0001>

<bundles_post_ra>
// kernel: tpu_custom_call.1
= control target key start
LH: loop header
LB: loop body
LE: loop exit
PB: predicated region body
PF: predicated region fallthrough
CT: control target
= control target key end

     0   :  { %17 = vsyncpa [#allocation3], 0  ;;  %s1702_s0 = inlined_call_operand.hbm [shape: f32[2,64,256], index: 0, kind: input, shape index: {}]   ;;  %s1703_s1 = inlined_call_operand.vmem [shape: f32[64,64], index: 1, kind: input, shape index: {}]   ;;  %s1704_s2 = inlined_call_operand.hbm [shape: f32[64,64], index: 2, kind: input, shape index: {}]   ;;  %s1705_s3 = inlined_call_operand.vmem [shape: f32[64,10], index: 3, kind: input, shape index: {}]   ;;  %s1706_s4 = inlined_call_operand.vmem [shape: f32[1,64], index: 4, kind: input, shape index: {}]   ;;  %s1707_s5 = inlined_call_operand.vmem [shape: f32[1,10], index: 5, kind: input, shape index: {}]   ;;  %s1708_s6 = inlined_call_operand.vmem [shape: f32[1,64], index: 6, kind: input, shape index: {}]   ;;  %s1709_s7 = inlined_call_operand.vmem [shape: f32[1,64], index: 7, kind: input, shape index: {}]   ;;  %s1710_s8 = inlined_call_operand.vmem [shape: f32[1,64], index: 8, kind: input, shape index: {}]   ;;  %s1711_s9 = inlined_call_operand.vmem [shape: f32[1,64], index: 9, kind: input, shape index: {}]   ;;  %s1712_s10 = inlined_call_operand.vmem [shape: f32[1,64], index: 10, kind: input, shape index: {}]   ;;  %s1713_s11 = inlined_call_operand.vmem [shape: f32[1,64], index: 11, kind: input, shape index: {}]   ;;  %s1714_s12 = inlined_call_operand.hbm [shape: f32[2,10], index: 12, kind: output, shape index: {}]  }
   0x1   :  { %18 = vsyncpa [#allocation6], 0 }
   0x2   :  { %19 = vsyncpa [#allocation4], 0  ;;  %s1270_s21 = smov [#allocation2]   ;;  %s1198_s25 = scalar_lea.hbm %s1702_s0, 4096 }
   0x3   :  { %s25_s22 = sshll.u32 %s1270_s21, 4  ;;  %p1199_p0 = scmp.ne.s32.totalorder %s1702_s0, %s1198_s25  ;;  %s26_s22 = int_to_ptr.vmem [resolvable:$true] %s25_s22 }
   0x4   :  { %p1202_p1 = scmp.lt.u32.totalorder %s1198_s25, %s1702_s0 }
   0x6   :  { %p1204_p2 = pnand %p1202_p1, %p1199_p0 }
   0x8   :  { %1207 = shalt.err (!%p1204_p2)
}
   0x9   :  { %s1208_s30 = scalar_lea.vmem %s26_s22, 4096  ;;  %p1213_p4 = scmp.lt.s32.totalorder %s26_s22, %s26_s22 }
   0xa   :  { %p1209_p3 = scmp.ne.s32.totalorder %s26_s22, %s1208_s30  ;;  %p1214_p5 = scmp.lt.s32.totalorder %s1208_s30, %s1208_s30 }
   0xc   :  { %p1215_p6 = por %p1214_p5, %p1213_p4 }
   0xe   :  { %p1216_p7 = pnand %p1215_p6, %p1209_p3 }
  0x10   :  { %1219 = shalt.err (!%p1216_p7)
}
  0x11   :  { %s1271_s13 = smov 256   ;;  %s1272_s14 = smov 16  }
  0x12   :  { %31 = dma.hbm_to_vmem [thread:$0]  %s1702_s0, 4096, %s26_s22, [#allocation3], %s1271_s13, %s1271_s13, %s1272_s14  }
  0x13   :  { %s1273_s17 = smov [#allocation5]   ;;  %s1220_s21 = scalar_lea.hbm %s1704_s2, 1024 }
  0x14   :  { %s39_s18 = sshll.u32 %s1273_s17, 4  ;;  %p1221_p8 = scmp.ne.s32.totalorder %s1704_s2, %s1220_s21  ;;  %s40_s18 = int_to_ptr.vmem [resolvable:$true] %s39_s18 }
  0x15   :  { %p1224_p9 = scmp.lt.u32.totalorder %s1220_s21, %s1704_s2 }
  0x17   :  { %p1226_p10 = pnand %p1224_p9, %p1221_p8 }
  0x19   :  { %1229 = shalt.err (!%p1226_p10)
}
  0x1a   :  { %s1230_s27 = scalar_lea.vmem %s40_s18, 1024  ;;  %p1235_p12 = scmp.lt.s32.totalorder %s40_s18, %s40_s18 }
  0x1b   :  { %p1231_p11 = scmp.ne.s32.totalorder %s40_s18, %s1230_s27  ;;  %p1236_p13 = scmp.lt.s32.totalorder %s1230_s27, %s1230_s27 }
  0x1d   :  { %p1237_p0 = por %p1236_p13, %p1235_p12 }
  0x1f   :  { %p1238_p1 = pnand %p1237_p0, %p1231_p11 }
  0x21   :  { %1241 = shalt.err (!%p1238_p1)
}
  0x22   :  { %s1274_s0 = smov 128   ;;  %s1275_s22 = smov 8  }
  0x23   :  { %45 = dma.hbm_to_vmem [thread:$0]  %s1704_s2, 1024, %s40_s18, [#allocation6], %s1274_s0, %s1274_s0, %s1275_s22  }
  0x24   :  { %1264 = dma.done.wait [#allocation3], 4096  }
  0x25   :  { %1265 = vsyncadd [#allocation3], 4294963200 }
  0x26   :  { %1266 = dma.done.wait [#allocation6], 1024  }
  0x27   :  { %1267 = vsyncadd [#allocation6], 4294966272  ;;  %v86_v0 = vld [vmem:[#allocation2 + $0x80] sm:$0xff]  ;;  %v87_v1 = vld [vmem:[#allocation2 + $0x88] sm:$0xff]  ;;  %vm1278_vm0 = vmmov 0   ;;  %vm550_vm1 = vcmask 130112  }
  0x28   :  { %v70_v2 = vld [vmem:[#allocation2] sm:$0xff]  ;;  %v126_v3 = vadd.f32 %v87_v1, %v86_v0  ;;  %v71_v4 = vld [vmem:[#allocation2 + $0x8] sm:$0xff]  ;;  %v88_v5 = vld [vmem:[#allocation2 + $0x90] sm:$0xff]  ;;  %v191_v27 = vmax.f32 %v86_v0, %v87_v1  ;;  %vm557_vm2 = vcmask 195712   ;;  %vm564_vm3 = vcmask 261312  }
  0x29   :  { %v89_v6 = vld [vmem:[#allocation2 + $0x98] sm:$0xff]  ;;  %v102_v7 = vadd.f32 %v71_v4, %v70_v2  ;;  %v72_v8 = vld [vmem:[#allocation2 + $0x10] sm:$0xff]  ;;  %v90_v12 = vld [vmem:[#allocation2 + $0xa0] sm:$0xff]  ;;  %v167_v25 = vmax.f32 %v70_v2, %v71_v4  ;;  %v1276_v4 = vmov 0   ;;  %vm571_vm4 = vcmask 326912  }
  0x2a   :  { %v73_v9 = vld [vmem:[#allocation2 + $0x18] sm:$0xff]  ;;  %127 = vadd.xlane.f32.xlu1 %v126_v3  ;;  %v129_v10 = vadd.f32 %v89_v6, %v88_v5  ;;  %v91_v13 = vld [vmem:[#allocation2 + $0xa8] sm:$0xff]  ;;  %v74_v14 = vld [vmem:[#allocation2 + $0x20] sm:$0xff]  ;;  %v194_v26 = vmax.f32 %v88_v5, %v89_v6  ;;  %1196 = vset.pattern.permute.xlu0 %v1276_v4  ;;  %vm578_vm5 = vcmask 392512   ;;  %vm585_vm6 = vcmask 458112  }
  0x2b   :  { %103 = vadd.xlane.f32.xlu0 %v102_v7  ;;  %v105_v11 = vadd.f32 %v73_v9, %v72_v8  ;;  %v75_v15 = vld [vmem:[#allocation2 + $0x28] sm:$0xff]  ;;  %v132_v16 = vadd.f32 %v91_v13, %v90_v12  ;;  %v92_v18 = vld [vmem:[#allocation2 + $0xb0] sm:$0xff]  ;;  %v93_v19 = vld [vmem:[#allocation2 + $0xb8] sm:$0xff]  ;;  %v170_v24 = vmax.f32 %v72_v8, %v73_v9  ;;  %v197_v34 = vmax.f32 %v90_v12, %v91_v13 }
  0x2c   :  { %v108_v17 = vadd.f32 %v75_v15, %v74_v14  ;;  %v76_v20 = vld [vmem:[#allocation2 + $0x30] sm:$0xff]  ;;  %v77_v21 = vld [vmem:[#allocation2 + $0x38] sm:$0xff]  ;;  %v135_v22 = vadd.f32 %v93_v19, %v92_v18  ;;  %v94_v28 = vld [vmem:[#allocation2 + $0xc0] sm:$0xff]  ;;  %v173_v35 = vmax.f32 %v74_v14, %v75_v15  ;;  %v200_v42 = vmax.f32 %v92_v18, %v93_v19  ;;  %1197 = vset.pattern.permute.xlu1 %v1276_v4 }
  0x2d   :  { %v111_v23 = vadd.f32 %v77_v21, %v76_v20  ;;  %v95_v29 = vld [vmem:[#allocation2 + $0xc8] sm:$0xff]  ;;  %v78_v30 = vld [vmem:[#allocation2 + $0x40] sm:$0xff]  ;;  %v96_v36 = vld [vmem:[#allocation2 + $0xd0] sm:$0xff]  ;;  %v176_v43 = vmax.f32 %v76_v20, %v77_v21  ;;  %vm592_vm7 = vcmask 523712   ;;  %vm633_vm8 = vcmask 1041409  }
  0x2e   :  { %130 = vadd.xlane.f32.xlu1 %v129_v10  ;;  %v79_v31 = vld [vmem:[#allocation2 + $0x48] sm:$0xff]  ;;  %v138_v32 = vadd.f32 %v95_v29, %v94_v28  ;;  %v97_v37 = vld [vmem:[#allocation2 + $0xd8] sm:$0xff]  ;;  %v80_v38 = vld [vmem:[#allocation2 + $0x50] sm:$0xff]  ;;  %v203_v50 = vmax.f32 %v94_v28, %v95_v29  ;;  %vm635_vm9 = vcmask 523264   ;;  %vm1036_vm10 = vcmask 74752  }
  0x2f   :  { %106 = vadd.xlane.f32.xlu0 %v105_v11  ;;  %v114_v33 = vadd.f32 %v79_v31, %v78_v30  ;;  %v81_v39 = vld [vmem:[#allocation2 + $0x58] sm:$0xff]  ;;  %v141_v40 = vadd.f32 %v97_v37, %v96_v36  ;;  %v98_v44 = vld [vmem:[#allocation2 + $0xe0] sm:$0xff]  ;;  %v99_v45 = vld [vmem:[#allocation2 + $0xe8] sm:$0xff]  ;;  %v179_v51 = vmax.f32 %v78_v30, %v79_v31  ;;  %v206_v58 = vmax.f32 %v96_v36, %v97_v37 }
  0x30   :  { %v117_v41 = vadd.f32 %v81_v39, %v80_v38  ;;  %v82_v46 = vld [vmem:[#allocation2 + $0x60] sm:$0xff]  ;;  %v83_v47 = vld [vmem:[#allocation2 + $0x68] sm:$0xff]  ;;  %v144_v48 = vadd.f32 %v99_v45, %v98_v44  ;;  %v100_v52 = vld [vmem:[#allocation2 + $0xf0] sm:$0xff]  ;;  %v182_v59 = vmax.f32 %v80_v38, %v81_v39  ;;  %v209_v60 = vmax.f32 %v98_v44, %v99_v45 }
  0x31   :  { %v120_v49 = vadd.f32 %v83_v47, %v82_v46  ;;  %v101_v53 = vld [vmem:[#allocation2 + $0xf8] sm:$0xff]  ;;  %v84_v54 = vld [vmem:[#allocation2 + $0x70] sm:$0xff]  ;;  %v185_v61 = vmax.f32 %v82_v46, %v83_v47  ;;  %v1054_v0 = vld [vmem:[%s1708_s6] ss:$0 sm:$0xff] }
  0x32   :  { %133 = vadd.xlane.f32.xlu1 %v132_v16  ;;  %v85_v55 = vld [vmem:[#allocation2 + $0x78] sm:$0xff]  ;;  %v147_v56 = vadd.f32 %v101_v53, %v100_v52  ;;  %v212_v62 = vmax.f32 %v100_v52, %v101_v53  ;;  %v1056_v1 = vld [vmem:[%s1710_s8] ss:$0 sm:$0xff] }
  0x33   :  { %109 = vadd.xlane.f32.xlu0 %v108_v17  ;;  %v123_v57 = vadd.f32 %v85_v55, %v84_v54  ;;  %v188_v63 = vmax.f32 %v84_v54, %v85_v55  ;;  %v1055_v2 = vld [vmem:[%s1709_s7] ss:$0 sm:$0xff] }
  0x34   :  { %v1057_v3 = vld [vmem:[%s1711_s9] ss:$0 sm:$0xff] }
  0x36   :  { %136 = vadd.xlane.f32.xlu1 %v135_v22 }
  0x37   :  { %112 = vadd.xlane.f32.xlu0 %v111_v23 }
  0x3a   :  { %171 = vmax.xlane.f32.xlu1 %v170_v24 }
  0x3b   :  { %168 = vmax.xlane.f32.xlu0 %v167_v25 }
  0x3e   :  { %195 = vmax.xlane.f32.xlu1 %v194_v26 }
  0x3f   :  { %192 = vmax.xlane.f32.xlu0 %v191_v27 }
  0x42   :  { %139 = vadd.xlane.f32.xlu1 %v138_v32 }
  0x43   :  { %115 = vadd.xlane.f32.xlu0 %v114_v33 }
  0x46   :  { %198 = vmax.xlane.f32.xlu1 %v197_v34 }
  0x47   :  { %174 = vmax.xlane.f32.xlu0 %v173_v35 }
  0x4a   :  { %142 = vadd.xlane.f32.xlu1 %v141_v40 }
  0x4b   :  { %118 = vadd.xlane.f32.xlu0 %v117_v41 }
  0x4e   :  { %201 = vmax.xlane.f32.xlu1 %v200_v42 }
  0x4f   :  { %177 = vmax.xlane.f32.xlu0 %v176_v43 }
  0x52   :  { %145 = vadd.xlane.f32.xlu1 %v144_v48 }
  0x53   :  { %121 = vadd.xlane.f32.xlu0 %v120_v49 }
  0x56   :  { %204 = vmax.xlane.f32.xlu1 %v203_v50 }
  0x57   :  { %180 = vmax.xlane.f32.xlu0 %v179_v51 }
  0x5a   :  { %148 = vadd.xlane.f32.xlu1 %v147_v56 }
  0x5b   :  { %124 = vadd.xlane.f32.xlu0 %v123_v57 }
  0x5e   :  { %207 = vmax.xlane.f32.xlu1 %v206_v58 }
  0x5f   :  { %183 = vmax.xlane.f32.xlu0 %v182_v59 }
  0x62   :  { %210 = vmax.xlane.f32.xlu1 %v209_v60 }
  0x63   :  { %186 = vmax.xlane.f32.xlu0 %v185_v61 }
  0x66   :  { %213 = vmax.xlane.f32.xlu1 %v212_v62 }
  0x67   :  { %189 = vmax.xlane.f32.xlu0 %v188_v63 }
  0x77   :  { %226 = vbcast.lane.b32.xlu1 %v1054_v0, 264 }
  0x7b   :  { %344 = vbcast.lane.b32.xlu1 %v1056_v1, 256 }
  0x7d   :  { %222 = vbcast.lane.b32.xlu0 %v1054_v0, 256 }
  0x7f   :  { %348 = vbcast.lane.b32.xlu1 %v1056_v1, 264 }
  0x81   :  { %230 = vbcast.lane.b32.xlu0 %v1054_v0, 272 }
  0x83   :  { %352 = vbcast.lane.b32.xlu1 %v1056_v1, 272 }
  0x85   :  { %234 = vbcast.lane.b32.xlu0 %v1054_v0, 280 }
  0x87   :  { %283 = vbcast.lane.b32.xlu1 %v1055_v2, 256 }
  0x89   :  { %287 = vbcast.lane.b32.xlu0 %v1055_v2, 264 }
  0x8b   :  { %356 = vbcast.lane.b32.xlu1 %v1056_v1, 280 }
  0x8d   :  { %405 = vbcast.lane.b32.xlu0 %v1057_v3, 256 }
  0x8f   :  { %409 = vbcast.lane.b32.xlu1 %v1057_v3, 264 }
  0x91   :  { %238 = vbcast.lane.b32.xlu0 %v1054_v0, 288 }
  0x93   :  { %291 = vbcast.lane.b32.xlu1 %v1055_v2, 272 }
  0x95   :  { %360 = vbcast.lane.b32.xlu0 %v1056_v1, 288 }
  0x97   :  { %413 = vbcast.lane.b32.xlu1 %v1057_v3, 272 }
  0x99   :  { %242 = vbcast.lane.b32.xlu0 %v1054_v0, 296 }
  0x9b   :  { %295 = vbcast.lane.b32.xlu1 %v1055_v2, 280 }
  0x9d   :  { %364 = vbcast.lane.b32.xlu0 %v1056_v1, 296 }
  0x9f   :  { %417 = vbcast.lane.b32.xlu1 %v1057_v3, 280 }
  0xa1   :  { %246 = vbcast.lane.b32.xlu0 %v1054_v0, 304 }
  0xa3   :  { %299 = vbcast.lane.b32.xlu1 %v1055_v2, 288 }
  0xa5   :  { %368 = vbcast.lane.b32.xlu0 %v1056_v1, 304 }
  0xa7   :  { %421 = vbcast.lane.b32.xlu1 %v1057_v3, 288 }
  0xa9   :  { %250 = vbcast.lane.b32.xlu0 %v1054_v0, 312 }
  0xab   :  { %303 = vbcast.lane.b32.xlu1 %v1055_v2, 296 }
  0xad   :  { %372 = vbcast.lane.b32.xlu0 %v1056_v1, 312 }
  0xaf   :  { %425 = vbcast.lane.b32.xlu1 %v1057_v3, 296 }
  0xb1   :  { %307 = vbcast.lane.b32.xlu0 %v1055_v2, 304 }
  0xb3   :  { %429 = vbcast.lane.b32.xlu1 %v1057_v3, 304 }
  0xb5   :  { %311 = vbcast.lane.b32.xlu0 %v1055_v2, 312 }
  0xb7   :  { %v1382_v5 = vpop.xlane.xlu1 %127  ;;  %433 = vbcast.lane.b32.xlu1 %v1057_v3, 312 }
  0xb8   :  { %v104_v6 = vpop.xlane.xlu0 %103  ;;  %v159_v4 = vmul.f32 0.00390625, %v1382_v5 }
  0xb9   :  { %v151_v61 = vmul.f32 0.00390625, %v104_v6 }
  0xbb   :  { %v131_v7 = vpop.xlane.xlu1 %130 }
  0xbc   :  { %v107_v8 = vpop.xlane.xlu0 %106  ;;  %v160_v62 = vmul.f32 0.00390625, %v131_v7 }
  0xbd   :  { %v152_v54 = vmul.f32 0.00390625, %v107_v8 }
  0xbf   :  { %v1384_v9 = vpop.xlane.xlu1 %133 }
  0xc0   :  { %v1386_v10 = vpop.xlane.xlu0 %109  ;;  %v161_v6 = vmul.f32 0.00390625, %v1384_v9 }
  0xc3   :  { %v1388_v11 = vpop.xlane.xlu1 %136 }
  0xc4   :  { %v1390_v12 = vpop.xlane.xlu0 %112  ;;  %v162_v9 = vmul.f32 0.00390625, %v1388_v11 }
  0xc7   :  { %v172_v13 = vpop.xlane.xlu1 %171 }
  0xc8   :  { %v169_v14 = vpop.xlane.xlu0 %168 }
  0xcb   :  { %v196_v15 = vpop.xlane.xlu1 %195 }
  0xcc   :  { %v193_v16 = vpop.xlane.xlu0 %192 }
  0xcf   :  { %v1392_v17 = vpop.xlane.xlu1 %139 }
  0xd0   :  { %v1394_v18 = vpop.xlane.xlu0 %115 }
  0xd3   :  { %v199_v19 = vpop.xlane.xlu1 %198 }
  0xd4   :  { %v1396_v20 = vpop.xlane.xlu0 %174 }
  0xd7   :  { %v1398_v21 = vpop.xlane.xlu1 %142 }
  0xd8   :  { %v1400_v22 = vpop.xlane.xlu0 %118 }
  0xdb   :  { %v1402_v23 = vpop.xlane.xlu1 %201 }
  0xdc   :  { %v1404_v24 = vpop.xlane.xlu0 %177 }
  0xdf   :  { %v1406_v25 = vpop.xlane.xlu1 %145 }
  0xe0   :  { %v1408_v26 = vpop.xlane.xlu0 %121 }
  0xe3   :  { %v1410_v27 = vpop.xlane.xlu1 %204 }
  0xe4   :  { %v1412_v28 = vpop.xlane.xlu0 %180 }
  0xe7   :  { %v1414_v29 = vpop.xlane.xlu1 %148 }
  0xe8   :  { %v1416_v30 = vpop.xlane.xlu0 %124 }
  0xeb   :  { %v1418_v31 = vpop.xlane.xlu1 %207 }
  0xec   :  { %v1420_v32 = vpop.xlane.xlu0 %183 }
  0xef   :  { %v1422_v33 = vpop.xlane.xlu1 %210 }
  0xf0   :  { %v1424_v34 = vpop.xlane.xlu0 %186 }
  0xf3   :  { %v1426_v35 = vpop.xlane.xlu1 %213 }
  0xf4   :  { %v1428_v36 = vpop.xlane.xlu0 %189 }
  0xf7   :  { %v227_v37 = vpop.permute.xlu1 %226 }
  0xf8   :  { %v223_v38 = vpop.permute.xlu0 %222  ;;  %v261_v57 = vmul.f32 %v227_v37, %v152_v54  ;;  %v269_v1 = vmul.f32 %v227_v37, %v160_v62 }
  0xf9   :  { %v260_v2 = vmul.f32 %v223_v38, %v151_v61 }
  0xfb   :  { %v345_v39 = vpop.permute.xlu1 %344 }
  0xfc   :  { %v231_v40 = vpop.permute.xlu0 %230  ;;  %v382_v45 = vmul.f32 %v345_v39, %v169_v14  ;;  %v390_v58 = vmul.f32 %v345_v39, %v193_v16 }
  0xfd   :  { %v270_v37 = vmul.f32 %v231_v40, %v161_v6 }
  0xff   :  { %v349_v41 = vpop.permute.xlu1 %348 }
 0x100   :  { %v1430_v42 = vpop.permute.xlu0 %234  ;;  %v383_v51 = vmul.f32 %v349_v41, %v172_v13  ;;  %v391_v52 = vmul.f32 %v349_v41, %v196_v15  ;;  %v268_v15 = vmul.f32 %v223_v38, %v159_v4 }
 0x103   :  { %v353_v43 = vpop.permute.xlu1 %352 }
 0x104   :  { %v288_v44 = vpop.permute.xlu0 %287  ;;  %v392_v16 = vmul.f32 %v353_v43, %v199_v19 }
 0x105   :  { %v322_v63 = vadd.f32 %v288_v44, %v261_v57  ;;  %v330_v8 = vadd.f32 %v288_v44, %v269_v1  ;;  %v153_v44 = vmul.f32 0.00390625, %v1386_v10 }
 0x107   :  { %v284_v46 = vpop.permute.xlu1 %283  ;;  %v262_v38 = vmul.f32 %v231_v40, %v153_v44  ;;  %v154_v40 = vmul.f32 0.00390625, %v1390_v12  ;;  %v155_v12 = vmul.f32 0.00390625, %v1394_v18  ;;  %v469_v44 = vld [vmem:[#allocation5 + $0x10] sm:$0xff] }
 0x108   :  { %v406_v47 = vpop.permute.xlu0 %405  ;;  %v321_v13 = vadd.f32 %v284_v46, %v260_v2  ;;  %v329_v7 = vadd.f32 %v284_v46, %v268_v15 }
 0x109   :  { %v443_v48 = vadd.f32 %v406_v47, %v382_v45  ;;  %v451_v0 = vadd.f32 %v406_v47, %v390_v58  ;;  %v384_v45 = vmul.f32 %v353_v43, %v1396_v20  ;;  %v271_v20 = vmul.f32 %v1430_v42, %v162_v9 }
 0x10a   :  { %v166_v9 = vmul.f32 0.00390625, %v1414_v29 }
 0x10b   :  { %492 = vperm.xlu0 %1196, %v443_v48   ;;  %v357_v49 = vpop.permute.xlu1 %356 }
 0x10c   :  { %v1432_v50 = vpop.permute.xlu0 %238  ;;  %v393_v19 = vmul.f32 %v357_v49, %v1402_v23  ;;  %v385_v43 = vmul.f32 %v357_v49, %v1404_v24 }
 0x10d   :  { %v264_v1 = vmul.f32 %v1432_v50, %v155_v12  ;;  %v1279_v12 = vmov 0.0  }
 0x10e   :  { %1108 = vmatprep.mubr.msk.f32.mxu0 %vm1278_vm0, %v1279_v12  ;;  %1127 = vmatprep.mubr.msk.f32.mxu1 %vm1278_vm0, %v1279_v12 }
 0x10f   :  { %v410_v53 = vpop.permute.xlu1 %409 }
 0x110   :  { %v444_v55 = vadd.f32 %v410_v53, %v383_v51  ;;  %v452_v56 = vadd.f32 %v410_v53, %v391_v52  ;;  %v361_v59 = vpop.permute.xlu0 %360 }
 0x111   :  { %v394_v57 = vmul.f32 %v361_v59, %v1410_v27  ;;  %v386_v49 = vmul.f32 %v361_v59, %v1412_v28 }
 0x112   :  { %495 = vperm.xlu1 %1197, %v444_v55   ;;  %519 = vperm.xlu0 %1196, %v452_v56   ;;  %v263_v56 = vmul.f32 %v1430_v42, %v154_v40 }
 0x113   :  { %v292_v60 = vpop.permute.xlu1 %291 }
 0x114   :  { %v1435_v14 = vpop.permute.xlu0 %242  ;;  %v331_v48 = vadd.f32 %v292_v60, %v270_v37  ;;  %v323_v46 = vadd.f32 %v292_v60, %v262_v38  ;;  %v163_v60 = vmul.f32 0.00390625, %v1392_v17  ;;  %v164_v17 = vmul.f32 0.00390625, %v1398_v21 }
 0x115   :  { %v165_v21 = vmul.f32 0.00390625, %v1406_v25 }
 0x116   :  { %516 = vperm.xlu1 %1197, %v451_v0   ;;  %728 = vperm.xlu0 %1196, %v322_v63   ;;  %v272_v24 = vmul.f32 %v1432_v50, %v163_v60  ;;  %v273_v28 = vmul.f32 %v1435_v14, %v164_v17  ;;  %v463_v60 = vld [vmem:[%s1703_s1 + $0x20] sm:$0xff] }
 0x117   :  { %v414_v3 = vpop.permute.xlu1 %413 }
 0x118   :  { %v453_v41 = vadd.f32 %v414_v3, %v392_v16  ;;  %v365_v47 = vpop.permute.xlu0 %364  ;;  %v445_v51 = vadd.f32 %v414_v3, %v384_v45 }
 0x119   :  { %v395_v2 = vmul.f32 %v365_v47, %v1418_v31  ;;  %v387_v59 = vmul.f32 %v365_v47, %v1420_v32  ;;  %v467_v32 = vld [vmem:[#allocation5] sm:$0xff]  ;;  %v1277_v47 = vmov 0.0|0.0  }
 0x11a   :  { %725 = vperm.xlu1 %1197, %v321_v13   ;;  %752 = vperm.xlu0 %1196, %v330_v8   ;;  %v156_v8 = vmul.f32 0.00390625, %v1400_v22 }
 0x11b   :  { %v296_v39 = vpop.permute.xlu1 %295  ;;  %1149 = vmatprep.subr.bf16.mxu0 %v1277_v47  ;;  %1161 = vmatprep.subr.bf16.mxu1 %v1277_v47 }
 0x11c   :  { %v1442_v54 = vpop.permute.xlu0 %246  ;;  %v332_v55 = vadd.f32 %v296_v39, %v271_v20  ;;  %v324_v61 = vadd.f32 %v296_v39, %v263_v56  ;;  %v265_v31 = vmul.f32 %v1435_v14, %v156_v8  ;;  %v158_v56 = vmul.f32 0.00390625, %v1416_v30  ;;  %v464_v30 = vld [vmem:[%s1703_s1 + $0x28] sm:$0xff] }
 0x11d   :  { %v274_v37 = vmul.f32 %v1442_v54, %v165_v21 }
 0x11e   :  { %749 = vperm.xlu1 %1197, %v329_v7   ;;  %522 = vperm.xlu0 %1196, %v453_v41   ;;  %v468_v41 = vld [vmem:[#allocation5 + $0x8] sm:$0xff] }
 0x11f   :  { %v418_v5 = vpop.permute.xlu1 %417  ;;  %v1150_v45 = vpack.c.bf16 %v468_v41, %v467_v32 }
 0x120   :  { %v454_v53 = vadd.f32 %v418_v5, %v393_v19  ;;  %v446_v23 = vadd.f32 %v418_v5, %v385_v43  ;;  %v369_v11 = vpop.permute.xlu0 %368  ;;  %v472_v43 = vld [vmem:[#allocation5 + $0x28] sm:$0xff] }
 0x121   :  { %v396_v16 = vmul.f32 %v369_v11, %v1422_v33  ;;  %v388_v22 = vmul.f32 %v369_v11, %v1424_v34  ;;  %v157_v33 = vmul.f32 0.00390625, %v1408_v26  ;;  %1151 = vmatpush3.bf16.msra.mxu0 %v1150_v45  ;;  %v459_v34 = vld [vmem:[%s1703_s1] sm:$0xff]  ;;  %v460_v26 = vld [vmem:[%s1703_s1 + $0x8] sm:$0xff] }
 0x122   :  { %498 = vperm.xlu1 %1197, %v445_v51   ;;  %755 = vperm.xlu0 %1196, %v331_v48   ;;  %v470_v48 = vld [vmem:[#allocation5 + $0x18] sm:$0xff] }
 0x123   :  { %v300_v52 = vpop.permute.xlu1 %299  ;;  %1152 = vmatprep.subr.bf16.mxu0 %v1277_v47  ;;  %v266_v51 = vmul.f32 %v1442_v54, %v157_v33  ;;  %v1153_v19 = vpack.c.bf16 %v470_v48, %v469_v44  ;;  %v471_v54 = vld [vmem:[#allocation5 + $0x20] sm:$0xff] }
 0x124   :  { %v333_v63 = vadd.f32 %v300_v52, %v272_v24  ;;  %v1453_v0 = vpop.permute.xlu0 %250  ;;  %v325_v3 = vadd.f32 %v300_v52, %v264_v1  ;;  %v1162_v52 = vpack.c.bf16 %v460_v26, %v459_v34  ;;  %v1156_v29 = vpack.c.bf16 %v472_v43, %v471_v54 }
 0x125   :  { %1154 = vmatpush3.bf16.msra.mxu0 %v1153_v19  ;;  %v1168_v24 = vpack.c.bf16 %v464_v30, %v463_v60 }
 0x126   :  { %731 = vperm.xlu1 %1197, %v323_v46   ;;  %525 = vperm.xlu0 %1196, %v454_v53  }
 0x127   :  { %v422_v10 = vpop.permute.xlu1 %421  ;;  %1163 = vmatpush3.bf16.msra.mxu1 %v1162_v52  ;;  %1155 = vmatprep.subr.bf16.mxu0 %v1277_v47 }
 0x128   :  { %v455_v62 = vadd.f32 %v422_v10, %v394_v57  ;;  %v447_v42 = vadd.f32 %v422_v10, %v386_v49  ;;  %v373_v18 = vpop.permute.xlu0 %372  ;;  %v275_v10 = vmul.f32 %v1453_v0, %v166_v9  ;;  %1164 = vmatprep.subr.bf16.mxu1 %v1277_v47 }
 0x129   :  { %v397_v38 = vmul.f32 %v373_v18, %v1426_v35  ;;  %v461_v35 = vld [vmem:[%s1703_s1 + $0x10] sm:$0xff]  ;;  %v389_v40 = vmul.f32 %v373_v18, %v1428_v36  ;;  %1157 = vmatpush3.bf16.msra.mxu0 %v1156_v29  ;;  %v474_v36 = vld [vmem:[#allocation5 + $0x38] sm:$0xff] }
 0x12a   :  { %501 = vperm.xlu1 %1197, %v446_v23   ;;  %758 = vperm.xlu0 %1196, %v332_v55   ;;  %v462_v55 = vld [vmem:[%s1703_s1 + $0x18] sm:$0xff] }
 0x12b   :  { %v304_v58 = vpop.permute.xlu1 %303  ;;  %v1165_v23 = vpack.c.bf16 %v462_v55, %v461_v35  ;;  %1158 = vmatprep.subr.bf16.mxu0 %v1277_v47 }
 0x12c   :  { %v334_v13 = vadd.f32 %v304_v58, %v273_v28  ;;  %v326_v39 = vadd.f32 %v304_v58, %v265_v31  ;;  %v308_v7 = vpop.permute.xlu0 %307  ;;  %v473_v58 = vld [vmem:[#allocation5 + $0x30] sm:$0xff] }
 0x12d   :  { %v335_v25 = vadd.f32 %v308_v7, %v274_v37  ;;  %v327_v46 = vadd.f32 %v308_v7, %v266_v51  ;;  %1166 = vmatpush3.bf16.msra.mxu1 %v1165_v23 }
 0x12e   :  { %734 = vperm.xlu1 %1197, %v324_v61   ;;  %528 = vperm.xlu0 %1196, %v455_v62   ;;  %v267_v61 = vmul.f32 %v1453_v0, %v158_v56  ;;  %v1159_v62 = vpack.c.bf16 %v474_v36, %v473_v58 }
 0x12f   :  { %v426_v27 = vpop.permute.xlu1 %425  ;;  %1167 = vmatprep.subr.bf16.mxu1 %v1277_v47 }
 0x130   :  { %v456_v4 = vadd.f32 %v426_v27, %v395_v2  ;;  %v448_v15 = vadd.f32 %v426_v27, %v387_v59  ;;  %v312_v20 = vpop.permute.xlu0 %311  ;;  %1160 = vmatpush3.bf16.msra.mxu0 %v1159_v62 }
 0x131   :  { %v336_v57 = vadd.f32 %v312_v20, %v275_v10  ;;  %v328_v49 = vadd.f32 %v312_v20, %v267_v61  ;;  %1169 = vmatpush3.bf16.msra.mxu1 %v1168_v24  ;;  %1173 = vmatprep.subr.bf16.mxu0 %v1277_v47 }
 0x132   :  { %761 = vperm.xlu0 %1196, %v333_v63   ;;  %504 = vperm.xlu1 %1197, %v447_v42   ;;  %v465_v63 = vld [vmem:[%s1703_s1 + $0x30] sm:$0xff]  ;;  %v466_v42 = vld [vmem:[%s1703_s1 + $0x38] sm:$0xff] }
 0x133   :  { %v430_v50 = vpop.permute.xlu1 %429  ;;  %1170 = vmatprep.subr.bf16.mxu1 %v1277_v47  ;;  %v1171_v0 = vpack.c.bf16 %v466_v42, %v465_v63 }
 0x134   :  { %v457_v6 = vadd.f32 %v430_v50, %v396_v16  ;;  %v449_v14 = vadd.f32 %v430_v50, %v388_v22 }
 0x135   :  { %1172 = vmatpush3.bf16.msra.mxu1 %v1171_v0 }
 0x136   :  { %737 = vperm.xlu1 %1197, %v325_v3   ;;  %531 = vperm.xlu0 %1196, %v456_v4  }
 0x137   :  { %v434_v5 = vpop.permute.xlu1 %433 }
 0x138   :  { %v458_v53 = vadd.f32 %v434_v5, %v397_v38  ;;  %v450_v11 = vadd.f32 %v434_v5, %v389_v40 }
 0x13a   :  { %764 = vperm.xlu0 %1196, %v334_v13   ;;  %507 = vperm.xlu1 %1197, %v448_v15  }
 0x13e   :  { %740 = vperm.xlu1 %1197, %v326_v39   ;;  %534 = vperm.xlu0 %1196, %v457_v6   ;;  %v539_v6 = vlaneseq }
 0x140   :  { %v540_v41 = vand.u32 127, %v539_v6  ;;  %v542_v33 = vshrl.u32 %v539_v6, 7 }
 0x142   :  { %510 = vperm.xlu1 %1197, %v449_v14   ;;  %767 = vperm.xlu0 %1196, %v335_v25   ;;  %v545_v45 = vadd.s32 4294967288, %v540_v41  ;;  %v552_v25 = vadd.s32 4294967280, %v540_v41  ;;  %v559_v44 = vadd.s32 4294967272, %v540_v41  ;;  %v566_v48 = vadd.s32 4294967264, %v540_v41 }
 0x143   :  { %v573_v51 = vadd.s32 4294967256, %v540_v41  ;;  %v580_v38 = vadd.s32 4294967248, %v540_v41  ;;  %v587_v19 = vadd.s32 4294967240, %v540_v41  ;;  %v543_v26 = vsub.s32 %v540_v41, %v542_v33 }
 0x144   :  { %v548_v34 = vsub.s32 %v545_v45, %v542_v33  ;;  %v555_v52 = vsub.s32 %v552_v25, %v542_v33  ;;  %v1563_v20 = vsub.s32 %v566_v48, %v542_v33 }
 0x145   :  { %v1566_v43 = vsub.s32 %v573_v51, %v542_v33  ;;  %v1568_v35 = vsub.s32 %v580_v38, %v542_v33  ;;  %v1572_v29 = vsub.s32 %v587_v19, %v542_v33 }
 0x146   :  { %537 = vperm.xlu0 %1196, %v458_v53   ;;  %743 = vperm.xlu1 %1197, %v327_v46   ;;  %v1561_v53 = vsub.s32 %v559_v44, %v542_v33 }
 0x14a   :  { %513 = vperm.xlu1 %1197, %v450_v11   ;;  %770 = vperm.xlu0 %1196, %v336_v57  }
 0x14e   :  { %746 = vperm.xlu1 %1197, %v328_v49  }
 0x18a   :  { %v1511_v27 = vpop.permute.xlu0 %492 }
 0x18b   :  { %v544_v55 = vrot.slane %v1511_v27, %v543_v26 }
 0x191   :  { %v1513_v1 = vpop.permute.xlu1 %495  ;;  %v1515_v2 = vpop.permute.xlu0 %519 }
 0x192   :  { %v549_v54 = vrot.slane %v1513_v1, %v548_v34  ;;  %v601_v23 = vrot.slane %v1515_v2, %v548_v34 }
 0x194   :  { %v551_v30 = vsel %vm550_vm1, %v549_v54, %v544_v55 }
 0x195   :  { %v1517_v17 = vpop.permute.xlu1 %516  ;;  %v1519_v3 = vpop.permute.xlu0 %728 }
 0x196   :  { %v597_v10 = vrot.slane %v1517_v17, %v543_v26  ;;  %v779_v36 = vrot.slane %v1519_v3, %v548_v34 }
 0x198   :  { %v602_v42 = vsel %vm550_vm1, %v601_v23, %v597_v10 }
 0x199   :  { %v1521_v4 = vpop.permute.xlu1 %725  ;;  %v1523_v28 = vpop.permute.xlu0 %752 }
 0x19a   :  { %v775_v40 = vrot.slane %v1521_v4, %v543_v26  ;;  %v818_v24 = vrot.slane %v1523_v28, %v548_v34 }
 0x19c   :  { %v780_v0 = vsel %vm550_vm1, %v779_v36, %v775_v40 }
 0x19d   :  { %v1525_v59 = vpop.permute.xlu1 %749  ;;  %v1527_v18 = vpop.permute.xlu0 %522 }
 0x19e   :  { %v814_v56 = vrot.slane %v1525_v59, %v543_v26  ;;  %v606_v57 = vrot.slane %v1527_v18, %v555_v52 }
 0x1a0   :  { %v819_v2 = vsel %vm550_vm1, %v818_v24, %v814_v56  ;;  %v607_v17 = vsel %vm557_vm2, %v606_v57, %v602_v42 }
 0x1a1   :  { %v1529_v8 = vpop.permute.xlu1 %498  ;;  %v1531_v13 = vpop.permute.xlu0 %755 }
 0x1a2   :  { %v556_v60 = vrot.slane %v1529_v8, %v555_v52  ;;  %v823_v61 = vrot.slane %v1531_v13, %v555_v52 }
 0x1a4   :  { %v558_v18 = vsel %vm557_vm2, %v556_v60, %v551_v30  ;;  %v824_v8 = vsel %vm557_vm2, %v823_v61, %v819_v2  ;;  %v951_v60 = vld [vmem:[%s1705_s3 + $0x18] sm:$0xff]  ;;  %v953_v30 = vld [vmem:[%s1705_s3 + $0x28] sm:$0xff]  ;;  %v1060_v2 = vld [vmem:[%s1706_s4] ss:$0 sm:$0xff]  ;;  %s1280_s4 = smov [#allocation7]  }
 0x1a5   :  { %v1533_v15 = vpop.permute.xlu1 %731  ;;  %v1535_v50 = vpop.permute.xlu0 %525  ;;  %s1044_s28 = sshll.u32 %s1280_s4, 4  ;;  %s1045_s28 = int_to_ptr.vmem [resolvable:$true] %s1044_s28 }
 0x1a6   :  { %v784_v62 = vrot.slane %v1533_v15, %v555_v52  ;;  %v611_v49 = vrot.slane %v1535_v50, %v1561_v53  ;;  %p1247_p3 = scmp.lt.s32.totalorder %s1045_s28, %s1045_s28 }
 0x1a8   :  { %v785_v13 = vsel %vm557_vm2, %v784_v62, %v780_v0  ;;  %v612_v50 = vsel %vm564_vm3, %v611_v49, %v607_v17  ;;  %v952_v62 = vld [vmem:[%s1705_s3 + $0x20] sm:$0xff]  ;;  %v954_v49 = vld [vmem:[%s1705_s3 + $0x30] sm:$0xff] }
 0x1a9   :  { %v1537_v31 = vpop.permute.xlu1 %501  ;;  %v1539_v16 = vpop.permute.xlu0 %758  ;;  %v1180_v24 = vpack.c.bf16 %v953_v30, %v952_v62 }
 0x1aa   :  { %v563_v63 = vrot.slane %v1537_v31, %v1561_v53  ;;  %v828_v27 = vrot.slane %v1539_v16, %v1561_v53 }
 0x1ac   :  { %v565_v31 = vsel %vm564_vm3, %v563_v63, %v558_v18  ;;  %v829_v6 = vsel %vm564_vm3, %v828_v27, %v824_v8  ;;  %v955_v63 = vld [vmem:[%s1705_s3 + $0x38] sm:$0xff] }
 0x1ad   :  { %v1541_v21 = vpop.permute.xlu1 %734  ;;  %v1543_v39 = vpop.permute.xlu0 %528  ;;  %v1183_v42 = vpack.c.bf16 %v955_v63, %v954_v49 }
 0x1ae   :  { %v616_v1 = vrot.slane %v1543_v39, %v1563_v20 }
 0x1b0   :  { %v617_v41 = vsel %vm571_vm4, %v616_v1, %v612_v50 }
 0x1b1   :  { %v1545_v7 = vpop.permute.xlu1 %504  ;;  %v1547_v32 = vpop.permute.xlu0 %761 }
 0x1b2   :  { %v570_v3 = vrot.slane %v1545_v7, %v1563_v20  ;;  %v789_v7 = vrot.slane %v1541_v21, %v1561_v53  ;;  %v833_v33 = vrot.slane %v1547_v32, %v1563_v20 }
 0x1b4   :  { %v572_v45 = vsel %vm571_vm4, %v570_v3, %v565_v31  ;;  %v790_v52 = vsel %vm564_vm3, %v789_v7, %v785_v13  ;;  %v1063_v13 = vld [vmem:[%s1707_s5] ss:$0 sm:$0xff] }
 0x1b5   :  { %v1549_v37 = vpop.permute.xlu1 %737  ;;  %v1551_v22 = vpop.permute.xlu0 %531 }
 0x1b6   :  { %v621_v4 = vrot.slane %v1551_v22, %v1566_v43  ;;  %v794_v25 = vrot.slane %v1549_v37, %v1563_v20 }
 0x1b8   :  { %v795_v20 = vsel %vm571_vm4, %v794_v25, %v790_v52 }
 0x1b9   :  { %v1553_v14 = vpop.permute.xlu1 %507  ;;  %v1555_v5 = vpop.permute.xlu0 %764 }
 0x1ba   :  { %v577_v15 = vrot.slane %v1553_v14, %v1566_v43  ;;  %v622_v14 = vsel %vm578_vm5, %v621_v4, %v617_v41  ;;  %v838_v21 = vrot.slane %v1555_v5, %v1566_v43  ;;  %v1061_v4 = vld [vmem:[%s1712_s10] ss:$0 sm:$0xff]  ;;  %s1242_s10 = scalar_lea.vmem %s1045_s28, 32 }
 0x1bb   :  { %p1243_p2 = scmp.ne.s32.totalorder %s1045_s28, %s1242_s10  ;;  %p1248_p4 = scmp.lt.s32.totalorder %s1242_s10, %s1242_s10 }
 0x1bc   :  { %v579_v34 = vsel %vm578_vm5, %v577_v15, %v572_v45 }
 0x1bd   :  { %v1557_v9 = vpop.permute.xlu1 %740  ;;  %v1559_v46 = vpop.permute.xlu0 %534  ;;  %p1249_p5 = por %p1248_p4, %p1247_p3 }
 0x1be   :  { %v626_v16 = vrot.slane %v1559_v46, %v1568_v35  ;;  %v799_v51 = vrot.slane %v1557_v9, %v1566_v43  ;;  %v834_v9 = vsel %vm571_vm4, %v833_v33, %v829_v6 }
 0x1bf   :  { %v839_v10 = vsel %vm578_vm5, %v838_v21, %v834_v9  ;;  %p1250_p6 = pnand %p1249_p5, %p1243_p2 }
 0x1c0   :  { %v627_v19 = vsel %vm585_vm6, %v626_v16, %v622_v14  ;;  %v800_v40 = vsel %vm578_vm5, %v799_v51, %v795_v20 }
 0x1c1   :  { %v511_v11 = vpop.permute.xlu1 %510  ;;  %v768_v58 = vpop.permute.xlu0 %767 }
 0x1c2   :  { %v584_v39 = vrot.slane %v511_v11, %v1568_v35  ;;  %v843_v37 = vrot.slane %v768_v58, %v1568_v35  ;;  %v949_v58 = vld [vmem:[%s1705_s3 + $0x8] sm:$0xff] }
 0x1c4   :  { %v586_v32 = vsel %vm585_vm6, %v584_v39, %v579_v34  ;;  %v844_v55 = vsel %vm585_vm6, %v843_v37, %v839_v10 }
 0x1c5   :  { %v744_v28 = vpop.permute.xlu1 %743  ;;  %v538_v59 = vpop.permute.xlu0 %537 }
 0x1c6   :  { %v631_v22 = vrot.slane %v538_v59, %v1572_v29  ;;  %v804_v26 = vrot.slane %v744_v28, %v1568_v35  ;;  %v1062_v59 = vld [vmem:[%s1713_s11] ss:$0 sm:$0xff] }
 0x1c8   :  { %v632_v46 = vsel %vm592_vm7, %v631_v22, %v627_v19  ;;  %v805_v23 = vsel %vm585_vm6, %v804_v26, %v800_v40 }
 0x1c9   :  { %v514_v44 = vpop.permute.xlu1 %513  ;;  %v771_v48 = vpop.permute.xlu0 %770 }
 0x1ca   :  { %v591_v38 = vrot.slane %v514_v44, %v1572_v29  ;;  %v848_v5 = vrot.slane %v771_v48, %v1572_v29 }
 0x1cc   :  { %v593_v53 = vsel %vm592_vm7, %v591_v38, %v586_v32  ;;  %v849_v56 = vsel %vm592_vm7, %v848_v5, %v844_v55 }
 0x1cd   :  { %v747_v54 = vpop.permute.xlu1 %746  ;;  %v634_v43 = vsel %vm633_vm8, %v632_v46, %v593_v53 }
 0x1ce   :  { %v809_v35 = vrot.slane %v747_v54, %v1572_v29  ;;  %1109 = vmatmul.mubr.msk.f32.vlgmr.msra.gmra.mrb[0].mxu0 %vm635_vm9, %v634_v43  ;;  %v948_v29 = vld [vmem:[%s1705_s3] sm:$0xff] }
 0x1cf   :  { %1146 = vmatprep.mubr.msk.f32.mxu0 %vm1278_vm0, %v1279_v12  ;;  %v1174_v36 = vpack.c.bf16 %v949_v58, %v948_v29  ;;  %v950_v12 = vld [vmem:[%s1705_s3 + $0x10] sm:$0xff] }
 0x1d0   :  { %v810_v57 = vsel %vm592_vm7, %v809_v35, %v805_v23  ;;  %v1177_v61 = vpack.c.bf16 %v951_v60, %v950_v12 }
 0x1d1   :  { %v850_v11 = vsel %vm633_vm8, %v849_v56, %v810_v57  ;;  %1175 = vmatpush3.bf16.msra.mxu0 %v1174_v36 }
 0x1d2   :  { %1128 = vmatmul.mubr.msk.f32.vlgmr.msra.gmra.mrb[0].mxu1 %vm635_vm9, %v850_v11  ;;  %1176 = vmatprep.subr.bf16.mxu0 %v1277_v47 }
 0x1d5   :  { %1178 = vmatpush3.bf16.msra.mxu0 %v1177_v61 }
 0x1d6   :  { %1179 = vmatprep.subr.bf16.mxu0 %v1277_v47 }
 0x1d9   :  { %1181 = vmatpush3.bf16.msra.mxu0 %v1180_v24 }
 0x1da   :  { %1182 = vmatprep.subr.bf16.mxu0 %v1277_v47 }
 0x1dd   :  { %1184 = vmatpush3.bf16.msra.mxu0 %v1183_v42 }
 0x2a1   :  { %v704_v0 = vpop.f32.mrb[0].mxu0 }
 0x2a2   :  { %v1110_v27 = vpop.f32.mrb[1].mxu0 }
 0x2a5   :  { %v919_v1 = vpop.f32.mrb[0].mxu1 }
 0x2a6   :  { %v920_v17 = vadd.f32 %v919_v1, %v704_v0  ;;  %v1129_v3 = vpop.f32.mrb[1].mxu1 }
 0x2a8   :  { %v930_v47 = vadd.f32 %v1060_v2, %v920_v17 }
 0x2aa   :  { %v931_v28 = vmax.f32 %v930_v47, 0.0 }
 0x2ac   :  { %v939_v18 = vmul.f32 %v1061_v4, %v931_v28 }
 0x2ae   :  { %v947_v8 = vadd.f32 %v1062_v59, %v939_v18 }
 0x2b0   :  { %1147 = vmatmul.mubr.msk.f32.vlgmr.msra.gmra.mrb[2].mxu0 %vm635_vm9, %v947_v8 }
 0x383   :  { %v1032_v15 = vpop.f32.mrb[2].mxu0 }
 0x384   :  { %v1033_v50 = vadd.f32 %v1063_v13, %v1032_v15  ;;  %v1148_v31 = vpop.f32.mrb[3].mxu0 }
 0x386   :  { %1037 = vst.msk [vmem:[#allocation7] sm:$0x3] %vm1036_vm10, %v1033_v50 }
 0x387   :  { %1253 = shalt.err (!%p1250_p6)
}
 0x388   :  { %s1254_s1 = scalar_lea.hbm %s1714_s12, 32 }
 0x389   :  { %p1255_p7 = scmp.ne.s32.totalorder %s1714_s12, %s1254_s1  ;;  %p1258_p8 = scmp.lt.u32.totalorder %s1254_s1, %s1714_s12 }
 0x38b   :  { %p1260_p9 = pnand %p1258_p8, %p1255_p7 }
 0x38d   :  { %1263 = shalt.err (!%p1260_p9)
}
 0x38e   :  { %1047 = dma.vmem_to_hbm [thread:$0]  %s1045_s28, 32, %s1714_s12, [#allocation4]  }
 0x38f   :  { %1268 = dma.done.wait [#allocation4], 32  }
 0x390   :  { %1269 = vsyncadd [#allocation4], 4294967264 }
 0x391   :  { %1051 = vsyncpa [#allocation3], 1 }
 0x392   :  { %1052 = vsyncpa [#allocation6], 1 }
 0x393   :  { %1053 = vsyncpa [#allocation4], 1 }

</bundles_post_ra>
